<compile_context>
chip_gen: v5e
topology: v5e:2x2
jax: 0.10.0
libtpu: 0.0.40
codegen_flags: <defaults>
</compile_context>

<pallas_src>
import functools

import jax
import jax.numpy as jnp
from jax.experimental import pallas as pl
from jax.experimental.pallas import tpu as pltpu

LANES = 128
SUBLANES = 8
MAX_TILE_ROWS = 8192   # (8192,128) f32 block = 4 MiB/input; 2 inputs x 2 bufs = 16 MiB VMEM
NUM_CORES = 2          # leading "parallel" grid axis (2 TCs on v7x; neutral elsewhere)


def _focal_bce_kernel(p_ref, t_ref, o_ref, *, n_full_rows, rem_lanes,
                      block_rows, tiles_per_core, hard_targets):
    c = pl.program_id(0)   # core (parallel)
    j = pl.program_id(1)   # tile within this core (sequential reduction)

    @pl.when(j == 0)
    def _():
        o_ref[...] = jnp.zeros_like(o_ref)

    p = p_ref[...].astype(jnp.float32)
    t = t_ref[...].astype(jnp.float32)

    if hard_targets:
        # Targets statically known to be 0/1: one log per element (halves EUP work).
        bce = -jnp.maximum(jnp.log(jnp.where(t > 0.5, p, 1.0 - p)), -100.0)
    else:
        # General (soft-target) path, matching F.binary_cross_entropy which
        # clamps log terms at -100 (avoids -inf / nan for p in {0,1}).
        log_p = jnp.maximum(jnp.log(p), -100.0)
        log_1mp = jnp.maximum(jnp.log(1.0 - p), -100.0)
        bce = -(t * log_p + (1.0 - t) * log_1mp)

    logical_tile = c * tiles_per_core + j
    row0 = logical_tile * block_rows
    # Tile is fully valid iff it ends at or before the last fully-valid row.
    fully_valid = row0 + block_rows <= n_full_rows

    @pl.when(fully_valid)
    def _():
        # Steady state: pure VALU vreg adds, unmasked full-tile accumulate.
        o_ref[...] += bce.reshape(block_rows // SUBLANES, SUBLANES, LANES).sum(axis=0)

    @pl.when(jnp.logical_not(fully_valid))
    def _():
        # Boundary tile (and clamped duplicate overhang tiles): mask past n.
        # Row/lane compares only -- no element-index*128, so no int32 overflow.
        row_idx = jax.lax.broadcasted_iota(jnp.int32, (block_rows, LANES), 0)
        global_row = row0 + row_idx
        valid = global_row < n_full_rows
        if rem_lanes:
            lane_idx = jax.lax.broadcasted_iota(jnp.int32, (block_rows, LANES), 1)
            valid = valid | ((global_row == n_full_rows) & (lane_idx < rem_lanes))
        masked = jnp.where(valid, bce, 0.0)
        o_ref[...] += masked.reshape(block_rows // SUBLANES, SUBLANES, LANES).sum(axis=0)


@functools.partial(jax.jit, static_argnames=("alpha", "gamma", "hard_targets"))
def focal_loss(inputs, targets, alpha=0.8, gamma=2.0, hard_targets=False):
    """Pallas TPU implementation of FocalLoss.forward. Returns a scalar f32."""
    p = inputs.reshape(-1)
    t = targets.reshape(-1)
    n = p.shape[0]

    # Pad flat length to a multiple of 8*128 so every row group is a full
    # (8,128) vreg tile (no dtype cast, no full-chunk padding); padded elements
    # are masked in-kernel.
    pad = (-n) % (SUBLANES * LANES)
    if pad:
        p = jnp.pad(p, (0, pad))
        t = jnp.pad(t, (0, pad))
    rows = (n + pad) // LANES

    block_rows = min(MAX_TILE_ROWS, rows)          # multiple of 8 by construction
    tiles_total = pl.cdiv(rows, block_rows)
    tiles_per_core = pl.cdiv(tiles_total, NUM_CORES)

    p2 = p.reshape(rows, LANES)
    t2 = t.reshape(rows, LANES)

    def in_map(c, j):
        # Clamp so the DMA never starts past the array; clamped (duplicate)
        # tiles contribute zero because the kernel masks on the *logical* index.
        return (jnp.minimum(c * tiles_per_core + j, tiles_total - 1), 0)

    kernel = functools.partial(
        _focal_bce_kernel,
        n_full_rows=n // LANES,
        rem_lanes=n % LANES,
        block_rows=block_rows,
        tiles_per_core=tiles_per_core,
        hard_targets=hard_targets,
    )

    partials = pl.pallas_call(
        kernel,
        out_shape=jax.ShapeDtypeStruct((NUM_CORES, SUBLANES, LANES), jnp.float32),
        grid=(NUM_CORES, tiles_per_core),
        in_specs=[
            pl.BlockSpec((block_rows, LANES), in_map),
            pl.BlockSpec((block_rows, LANES), in_map),
        ],
        out_specs=pl.BlockSpec((None, SUBLANES, LANES), lambda c, j: (c, 0, 0)),
        compiler_params=pltpu.CompilerParams(
            dimension_semantics=("parallel", "arbitrary"),
            # 16 MiB of input double-buffers fits everywhere once the scoped
            # limit is raised past v5e's 16 MiB default.
            vmem_limit_bytes=32 * 1024 * 1024,
        ),
    )(p2, t2)

    # Tiny scalar epilogue (cross-core/lane combine + mean + focal transform).
    bce_mean = jnp.sum(partials) / n
    return alpha * (1.0 - jnp.exp(-bce_mean)) ** gamma * bce_mean


def _focal_loss_ref(inputs, targets, alpha=0.8, gamma=2.0):
    p = inputs.reshape(-1).astype(jnp.float32)
    t = targets.reshape(-1).astype(jnp.float32)
    log_p = jnp.maximum(jnp.log(p), -100.0)
    log_1mp = jnp.maximum(jnp.log(1.0 - p), -100.0)
    bce = jnp.mean(-(t * log_p + (1.0 - t) * log_1mp))
    return alpha * (1.0 - jnp.exp(-bce)) ** gamma * bce


if __name__ == "__main__":
    key = jax.random.PRNGKey(0)
    k1, k2 = jax.random.split(key)

    # FocalLoss expects probabilities (F.binary_cross_entropy); targets are 0/1.
    # layout: NCHW [2, 4, 16, 16] like a small segmentation head output.
    logits = jax.random.normal(k1, (2, 4, 16, 16), dtype=jnp.float32)
    inputs = jax.nn.sigmoid(logits)
    targets = (jax.random.uniform(k2, (2, 4, 16, 16)) > 0.5).astype(jnp.float32)

    ref = _focal_loss_ref(inputs, targets, alpha=0.8, gamma=2.0)

    # Default (soft-target-capable) two-log path.
    out = jax.block_until_ready(focal_loss(inputs, targets, alpha=0.8, gamma=2.0))
    assert jnp.allclose(out, ref, rtol=1e-5, atol=1e-6), (out, ref)

    # Hard-target (single-log) fast path; valid here since targets are 0/1.
    out_hard = jax.block_until_ready(
        focal_loss(inputs, targets, alpha=0.8, gamma=2.0, hard_targets=True))
    assert jnp.allclose(out_hard, ref, rtol=1e-5, atol=1e-6), (out_hard, ref)

    print("KERNEL_OK")
</pallas_src>

<mosaic_0001>
module attributes {stable_mosaic.version = 11 : i64} {
  func.func @_focal_bce_kernel(%arg0: i32, %arg1: i32, %arg2: memref<16x128xf32, #tpu.memory_space<vmem>>, %arg3: memref<16x128xf32, #tpu.memory_space<vmem>>, %arg4: memref<1x8x128xf32, #tpu.memory_space<vmem>>) attributes {dimension_semantics = [#tpu.dimension_semantics<parallel>, #tpu.dimension_semantics<arbitrary>], iteration_bounds = array<i64: 2, 1>, scalar_prefetch = 0 : i64, scratch_operands = 0 : i64, tpu.core_type = #tpu.core_type<tc>, window_params = [{transform_indices = @transform_0, window_bounds = array<i64: 16, 128>}, {transform_indices = @transform_1, window_bounds = array<i64: 16, 128>}, {transform_indices = @transform_2, window_bounds = array<i64: 1, 8, 128>}]} {
    %c0_i32 = arith.constant 0 : i32
    %0 = arith.cmpi eq, %arg1, %c0_i32 : i32
    %1 = arith.extui %0 : i1 to i32
    %c0_i32_0 = arith.constant 0 : i32
    %2 = arith.cmpi ne, %1, %c0_i32_0 : i32
    scf.if %2 {
      %cst_12 = arith.constant 0.000000e+00 : f32
      %30 = vector.broadcast %cst_12 : f32 to vector<8x128xf32>
      %c0_13 = arith.constant 0 : index
      %c0_14 = arith.constant 0 : index
      %c0_15 = arith.constant 0 : index
      %31 = vector.load %arg4[%c0_13, %c0_14, %c0_15] : memref<1x8x128xf32, #tpu.memory_space<vmem>>, vector<1x8x128xf32>
      %32 = vector.shape_cast %31 : vector<1x8x128xf32> to vector<8x128xf32>
      %33 = vector.shape_cast %30 : vector<8x128xf32> to vector<1x8x128xf32>
      tpu.vector_store %arg4[%c0_13, %c0_14, %c0_15], %33 {strides = array<i32>} : memref<1x8x128xf32, #tpu.memory_space<vmem>>, vector<1x8x128xf32>,
    } else {
    }
    %c0 = arith.constant 0 : index
    %c0_1 = arith.constant 0 : index
    %3 = vector.load %arg2[%c0, %c0_1] : memref<16x128xf32, #tpu.memory_space<vmem>>, vector<16x128xf32>
    %c0_2 = arith.constant 0 : index
    %c0_3 = arith.constant 0 : index
    %4 = vector.load %arg3[%c0_2, %c0_3] : memref<16x128xf32, #tpu.memory_space<vmem>>, vector<16x128xf32>
    %5 = math.log %3 : vector<16x128xf32>
    %cst = arith.constant -1.000000e+02 : f32
    %6 = vector.broadcast %cst : f32 to vector<16x128xf32>
    %7 = arith.maximumf %5, %6 : vector<16x128xf32>
    %cst_4 = arith.constant 1.000000e+00 : f32
    %8 = vector.broadcast %cst_4 : f32 to vector<16x128xf32>
    %9 = arith.subf %8, %3 : vector<16x128xf32>
    %10 = math.log %9 : vector<16x128xf32>
    %cst_5 = arith.constant -1.000000e+02 : f32
    %11 = vector.broadcast %cst_5 : f32 to vector<16x128xf32>
    %12 = arith.maximumf %10, %11 : vector<16x128xf32>
    %13 = arith.mulf %4, %7 : vector<16x128xf32>
    %cst_6 = arith.constant 1.000000e+00 : f32
    %14 = vector.broadcast %cst_6 : f32 to vector<16x128xf32>
    %15 = arith.subf %14, %4 : vector<16x128xf32>
    %16 = arith.mulf %15, %12 : vector<16x128xf32>
    %17 = arith.addf %13, %16 : vector<16x128xf32>
    %cst_7 = arith.constant 0.000000e+00 : f32
    %18 = vector.broadcast %cst_7 : f32 to vector<16x128xf32>
    %19 = arith.subf %18, %17 : vector<16x128xf32>
    %c1_i32 = arith.constant 1 : i32
    %20 = arith.muli %arg0, %c1_i32 : i32
    %21 = arith.addi %20, %arg1 : i32
    %c16_i32 = arith.constant 16 : i32
    %22 = arith.muli %21, %c16_i32 : i32
    %c16_i32_8 = arith.constant 16 : i32
    %23 = arith.addi %22, %c16_i32_8 : i32
    %c16_i32_9 = arith.constant 16 : i32
    %24 = arith.cmpi sle, %23, %c16_i32_9 : i32
    %25 = arith.extui %24 : i1 to i32
    %c0_i32_10 = arith.constant 0 : i32
    %26 = arith.cmpi ne, %25, %c0_i32_10 : i32
    scf.if %26 {
      %c0_12 = arith.constant 0 : index
      %c0_13 = arith.constant 0 : index
      %c0_14 = arith.constant 0 : index
      %30 = vector.load %arg4[%c0_12, %c0_13, %c0_14] : memref<1x8x128xf32, #tpu.memory_space<vmem>>, vector<1x8x128xf32>
      %31 = vector.shape_cast %30 : vector<1x8x128xf32> to vector<8x128xf32>
      %32 = vector.shape_cast %19 : vector<16x128xf32> to vector<2x8x128xf32>
      %cst_15 = arith.constant dense<0.000000e+00> : vector<8x128xf32>
      %33 = vector.multi_reduction <add>, %32, %cst_15 [0] : vector<2x8x128xf32> to vector<8x128xf32>
      %34 = arith.addf %31, %33 : vector<8x128xf32>
      %c0_16 = arith.constant 0 : index
      %c0_17 = arith.constant 0 : index
      %c0_18 = arith.constant 0 : index
      %35 = vector.load %arg4[%c0_16, %c0_17, %c0_18] : memref<1x8x128xf32, #tpu.memory_space<vmem>>, vector<1x8x128xf32>
      %36 = vector.shape_cast %35 : vector<1x8x128xf32> to vector<8x128xf32>
      %37 = vector.shape_cast %34 : vector<8x128xf32> to vector<1x8x128xf32>
      tpu.vector_store %arg4[%c0_16, %c0_17, %c0_18], %37 {strides = array<i32>} : memref<1x8x128xf32, #tpu.memory_space<vmem>>, vector<1x8x128xf32>,
    } else {
    }
    %true = arith.constant true
    %27 = arith.xori %24, %true : i1
    %28 = arith.extui %27 : i1 to i32
    %c0_i32_11 = arith.constant 0 : i32
    %29 = arith.cmpi ne, %28, %c0_i32_11 : i32
    scf.if %29 {
      %30 = tpu.iota {dimensions = array<i32: 0>} : vector<16x128xi32>
      %31 = vector.broadcast %22 : i32 to vector<16x128xi32>
      %32 = arith.addi %31, %30 : vector<16x128xi32>
      %c16_i32_12 = arith.constant 16 : i32
      %33 = vector.broadcast %c16_i32_12 : i32 to vector<16x128xi32>
      %34 = arith.cmpi slt, %32, %33 : vector<16x128xi32>
      %cst_13 = arith.constant 0.000000e+00 : f32
      %35 = vector.broadcast %cst_13 : f32 to vector<16x128xf32>
      %36 = arith.select %34, %19, %35 : vector<16x128xi1>, vector<16x128xf32>
      %c0_14 = arith.constant 0 : index
      %c0_15 = arith.constant 0 : index
      %c0_16 = arith.constant 0 : index
      %37 = vector.load %arg4[%c0_14, %c0_15, %c0_16] : memref<1x8x128xf32, #tpu.memory_space<vmem>>, vector<1x8x128xf32>
      %38 = vector.shape_cast %37 : vector<1x8x128xf32> to vector<8x128xf32>
      %39 = vector.shape_cast %36 : vector<16x128xf32> to vector<2x8x128xf32>
      %cst_17 = arith.constant dense<0.000000e+00> : vector<8x128xf32>
      %40 = vector.multi_reduction <add>, %39, %cst_17 [0] : vector<2x8x128xf32> to vector<8x128xf32>
      %41 = arith.addf %38, %40 : vector<8x128xf32>
      %c0_18 = arith.constant 0 : index
      %c0_19 = arith.constant 0 : index
      %c0_20 = arith.constant 0 : index
      %42 = vector.load %arg4[%c0_18, %c0_19, %c0_20] : memref<1x8x128xf32, #tpu.memory_space<vmem>>, vector<1x8x128xf32>
      %43 = vector.shape_cast %42 : vector<1x8x128xf32> to vector<8x128xf32>
      %44 = vector.shape_cast %41 : vector<8x128xf32> to vector<1x8x128xf32>
      tpu.vector_store %arg4[%c0_18, %c0_19, %c0_20], %44 {strides = array<i32>} : memref<1x8x128xf32, #tpu.memory_space<vmem>>, vector<1x8x128xf32>,
    } else {
    }
    return
  }
  func.func @transform_0(%arg0: i32, %arg1: i32) -> (i32, i32) {
    %c1_i32 = arith.constant 1 : i32
    %0 = arith.muli %arg0, %c1_i32 : i32
    %1 = arith.addi %0, %arg1 : i32
    %c0_i32 = arith.constant 0 : i32
    %2 = arith.minsi %1, %c0_i32 : i32
    %c0_i32_0 = arith.constant 0 : i32
    %c0_i32_1 = arith.constant 0 : i32
    return %2, %c0_i32_0 : i32, i32
  }
  func.func @transform_1(%arg0: i32, %arg1: i32) -> (i32, i32) {
    %c1_i32 = arith.constant 1 : i32
    %0 = arith.muli %arg0, %c1_i32 : i32
    %1 = arith.addi %0, %arg1 : i32
    %c0_i32 = arith.constant 0 : i32
    %2 = arith.minsi %1, %c0_i32 : i32
    %c0_i32_0 = arith.constant 0 : i32
    %c0_i32_1 = arith.constant 0 : i32
    return %2, %c0_i32_0 : i32, i32
  }
  func.func @transform_2(%arg0: i32, %arg1: i32) -> (i32, i32, i32) {
    %c0_i32 = arith.constant 0 : i32
    %c0_i32_0 = arith.constant 0 : i32
    %c0_i32_1 = arith.constant 0 : i32
    return %arg0, %c0_i32, %c0_i32_0 : i32, i32, i32
  }
}

</mosaic_0001>

<bundles_post_ra>
// kernel: focal_loss.1
= control target key start
LH: loop header
LB: loop body
LE: loop exit
PB: predicated region body
PF: predicated region fallthrough
CT: control target
= control target key end

     0   :  { %s443_s9 = smov 0   ;;  %s445_s10 = smov 0   ;;  %s501_s0 = inlined_call_operand.vmem [shape: f32[16,128], index: 0, kind: input, shape index: {}]   ;;  %s502_s1 = inlined_call_operand.vmem [shape: f32[16,128], index: 1, kind: input, shape index: {}]   ;;  %s503_s2 = inlined_call_operand.vmem [shape: f32[2,8,128], index: 2, kind: output, shape index: {}]  }
   0x1   :  { %s447_s11 = smov 0  }
   0x2 LB: > { %s24_s12 = sadd.s32 1, %s421_s10  ;;  %p359_p0 = scmp.ge.s32.totalorder %s425_s11, 1  ;;  %s425_s11 = sphi %s447_s11, %s12_s11   ;;  %s421_s10 = sphi %s445_s10, %s505_s10   ;;  %s417_s9 = sphi %s443_s9, %s504_s9  }
   0x3   : > { %p26_p1 = scmp.ge.s32.totalorder %s24_s12, 2  ;;  %p160_p2 = scmp.lt.s32.totalorder %s425_s11, 3 }
   0x5   : > { %s507_s12 = smov (%p26_p1, %s24_s12), 0  ;;  %p161_p3 = pnand %p359_p0, %p160_p2 }
   0x6   : > { %p193_p4 = scmp.lt.s32.totalorder (!%p161_p3), %s417_s9, 0  ;;  %p216_p5 = scmp.lt.s32.totalorder (!%p161_p3), %s417_s9, 1 }
   0x7   : > { %164 = sbr.rel (%p161_p3) target bundleno = 68 (0x44), region = 28  ;;  %s365_s13 = sshll.u32 (!%p161_p3), %s417_s9, 4 }
   0x8   : > { %s470_s17 = sadd.s32 (!%p161_p3), 16, %s365_s13 }
   0x9   : > { %p366_p7 = scmp.gt.s32.totalorder (!%p161_p3), %s470_s17, 16 }
   0xc   : > { %s194_s14 = scalar_select %p193_p4, %s417_s9, 0  ;;  %v427_v0 = vmov 0.0  }
   0xd   : > { %s217_s15 = scalar_select %p216_p5, %s417_s9, 1 }
   0xe   : > { %s360_s16 = sshll.u32 %s194_s14, 1 }
   0xf   : > { %p196_p6 = scmp.lt.s32.totalorder %s360_s16, 1  ;;  %s364_s18 = sshll.u32 %s217_s15, 3 }
  0x10   : > { %s475_s21 = scalar_lea.vmem %s503_s2, %s364_s18 }
  0x11   : > { %s509_s16 = smov (!%p196_p6, %s360_s16), 1  ;;  %224 = vst [vmem:[%s475_s21] sm:$0xff] %v427_v0 }
  0x12   : > { %s361_s22 = sshll.u32 %s509_s16, 3 }
  0x13   : > { %s199_s25 = scalar_lea.vmem %s501_s0, %s361_s22  ;;  %s211_s28 = scalar_lea.vmem %s502_s1, %s361_s22 }
  0x14   : > { %v225_v1 = vld [vmem:[%s199_s25] sm:$0xff]  ;;  %v226_v2 = vld [vmem:[%s199_s25 + $0x8] sm:$0xff] }
  0x15   : > { %395 = vlog2.f32 %v225_v1  ;;  %v235_v3 = vsub.f32 1.0, %v225_v1  ;;  %v236_v4 = vsub.f32 1.0, %v226_v2  ;;  %v227_v6 = vld [vmem:[%s211_s28] sm:$0xff]  ;;  %v228_v8 = vld [vmem:[%s211_s28 + $0x8] sm:$0xff] }
  0x16   : > { %397 = vlog2.f32 %v226_v2  ;;  %v245_v15 = vsub.f32 1.0, %v227_v6  ;;  %v246_v18 = vsub.f32 1.0, %v228_v8 }
  0x17   : > { %399 = vlog2.f32 %v235_v3 }
  0x18   : > { %401 = vlog2.f32 %v236_v4 }
  0x1b   : > { %v396_v5 = vpop.eup %395 }
  0x1c   : > { %v398_v7 = vpop.eup %397  ;;  %v230_v9 = vmul.f32 0.6931472, %v396_v5 }
  0x1d   : > { %v400_v10 = vpop.eup %399  ;;  %v232_v11 = vmul.f32 0.6931472, %v398_v7 }
  0x1e   : > { %v402_v12 = vpop.eup %401  ;;  %v233_v13 = vmax.f32 %v230_v9, -100.0  ;;  %v238_v14 = vmul.f32 0.6931472, %v400_v10 }
  0x1f   : > { %v234_v16 = vmax.f32 %v232_v11, -100.0  ;;  %v240_v17 = vmul.f32 0.6931472, %v402_v12 }
  0x20   : > { %v241_v19 = vmax.f32 %v238_v14, -100.0  ;;  %v243_v20 = vmul.f32 %v233_v13, %v227_v6 }
  0x21   : > { %v242_v21 = vmax.f32 %v240_v17, -100.0  ;;  %v244_v22 = vmul.f32 %v234_v16, %v228_v8 }
  0x22   : > { %v247_v23 = vmul.f32 %v245_v15, %v241_v19 }
  0x23   : > { %v248_v24 = vmul.f32 %v246_v18, %v242_v21  ;;  %259 = sbr.rel (%p366_p7) target bundleno = 46 (0x2e), region = 36 }
  0x24   : > { %v249_v25 = vadd.f32 %v247_v23, %v243_v20 }
  0x25   : > { %v250_v26 = vadd.f32 %v248_v24, %v244_v22 }
  0x26   : > { %v251_v27 = vsub.f32 0.0, %v249_v25 }
  0x27   : > { %v252_v28 = vsub.f32 0.0, %v250_v26 }
  0x28   : > { %v260_v29 = vld [vmem:[%s475_s21] sm:$0xff] }
  0x29   : > { %v261_v30 = vadd.f32 %v252_v28, %v251_v27 }
  0x2b   : > { %v262_v31 = vadd.f32 %v261_v30, %v260_v29 }
  0x2d   : > { %263 = vst [vmem:[%s475_s21] sm:$0xff] %v262_v31 }
  0x2e PF: > { %p367_p8 = scmp.le.s32.totalorder %s470_s17, 16 }
  0x30   : > { %267 = sbr.rel (%p367_p8) target bundleno = 68 (0x44), region = 40 }
  0x35   : > { %v268_v32 = vlaneseq  ;;  %v271_v33 = vstv %s365_s13  ;;  %v278_v40 = vld [vmem:[%s475_s21] sm:$0xff] }
  0x37   : > { %v269_v34 = vshrl.u32 %v268_v32, 7 }
  0x39   : > { %v270_v35 = vadd.s32 8, %v269_v34  ;;  %v272_v36 = vadd.s32 %v271_v33, %v269_v34 }
  0x3b   : > { %v273_v37 = vadd.s32 %v271_v33, %v270_v35  ;;  %vm274_vm0 = vcmp.lt.s32.totalorder %v272_v36, 16 }
  0x3c   : > { %v276_v38 = vsel %vm274_vm0, %v251_v27, 0.0 }
  0x3d   : > { %vm275_vm1 = vcmp.lt.s32.totalorder %v273_v37, 16 }
  0x3e   : > { %v277_v39 = vsel %vm275_vm1, %v252_v28, 0.0 }
  0x3f   : > { %v279_v41 = vadd.f32 %v277_v39, %v276_v38 }
  0x41   : > { %v280_v42 = vadd.f32 %v279_v41, %v278_v40 }
  0x43   : > { %281 = vst [vmem:[%s475_s21] sm:$0xff] %v280_v42 }
  0x44 PF: > { %s12_s11 = sadd.s32 1, %s425_s11   ;;  %s504_s9 = smov %s421_s10 }
  0x45   : > { %p9_p9 = scmp.ge.s32.totalorder %s12_s11, 4   ;;  %s505_s10 = smov %s507_s12 }
  0x47   :  { %11 = sbr.rel (!%p9_p9) target bundleno = 2 (0x2), region = 73 }

</bundles_post_ra>
